<compile_context>
chip_gen: v6e
topology: v6e:2x2x1
jax: 0.10.0
libtpu: 0.0.40
codegen_flags: <defaults>
</compile_context>

<pallas_src>
import jax
import jax.numpy as jnp
from jax.experimental import pallas as pl
from jax.experimental.pallas import tpu as pltpu

LANE = 128      # TPU lane width: every feature dim is padded to this
SUBLANE = 8     # sublane granularity: row counts padded to a multiple of this


# ------------------------------ helpers ------------------------------------ #
def _pad2d(x, rows, cols):
    r, c = x.shape
    return jnp.pad(x, ((0, rows - r), (0, cols - c)))


def _round_up(n, m):
    return ((n + m - 1) // m) * m


# --------------------- shared padded/bf16 forward math ---------------------- #
# Used both inside the Pallas kernel (on Ref loads) and as the bf16-matched
# pure-JAX reference, so the kernel is checked against the exact same math.
def _gnn_math(x, a, p, w0, b0, w1, b1, w2, b2, wd, bd):
    def loopy_conv(h_bf16, w, b):
        # neighbour sum aggregation: bf16 MXU operands, f32 accumulation
        agg = jnp.dot(a, h_bf16, preferred_element_type=jnp.float32)
        # fused self+neighbour matmul: one wider-K dot against stacked [Ws; Wn]
        cat = jnp.concatenate([h_bf16, agg.astype(jnp.bfloat16)], axis=-1)
        return jnp.dot(cat, w, preferred_element_type=jnp.float32) + b

    # conv 0 : F -> H, norm = Identity, relu
    h = loopy_conv(x, w0, b0)
    h = jnp.maximum(h, 0.0)
    # conv 1 : H -> H, norm = Identity, relu
    h = loopy_conv(h.astype(jnp.bfloat16), w1, b1)
    h = jnp.maximum(h, 0.0)
    # conv 2 : H -> H, norm = Identity, NO relu after last conv
    h = loopy_conv(h.astype(jnp.bfloat16), w2, b2)

    # graph pooling (reduce='sum')  ==  P @ h
    g = jnp.dot(p, h.astype(jnp.bfloat16), preferred_element_type=jnp.float32)
    # decoder (single Linear H -> OUT, no trailing nonlinearity)
    return jnp.dot(g.astype(jnp.bfloat16), wd,
                   preferred_element_type=jnp.float32) + bd


# ------------------------------ Pallas kernel ------------------------------- #
def _gnn_kernel(x_ref, a_ref, p_ref,
                w0_ref, b0_ref, w1_ref, b1_ref, w2_ref, b2_ref,
                wd_ref, bd_ref, out_ref):
    out_ref[...] = _gnn_math(
        x_ref[...], a_ref[...], p_ref[...],
        w0_ref[...], b0_ref[...], w1_ref[...], b1_ref[...],
        w2_ref[...], b2_ref[...], wd_ref[...], bd_ref[...])


# ------------------------------ wrapper ------------------------------------ #
@jax.jit
def gnn_forward(x_p, a_p, p_p, w0, b0, w1, b1, w2, b2, wd, bd):
    n_pad = a_p.shape[0]
    g_pad = p_p.shape[0]
    f_pad = x_p.shape[1]
    h_pad = w0.shape[1]
    d_pad = wd.shape[1]

    # advisory cost estimate for the XLA scheduler
    flops = 2 * (n_pad * n_pad * (f_pad + 2 * h_pad)        # A@h aggregations
                 + n_pad * (f_pad + h_pad) * h_pad          # fused conv0 dot
                 + 2 * n_pad * (2 * h_pad) * h_pad          # fused conv1/2 dots
                 + g_pad * n_pad * h_pad                    # pooling
                 + g_pad * h_pad * d_pad)                   # decoder
    bytes_accessed = sum(int(t.size) * t.dtype.itemsize
                         for t in (x_p, a_p, p_p, w0, b0, w1, b1, w2, b2, wd, bd))
    bytes_accessed += g_pad * d_pad * 4

    vmem = pl.BlockSpec(memory_space=pltpu.MemorySpace.VMEM)
    return pl.pallas_call(
        _gnn_kernel,
        out_shape=jax.ShapeDtypeStruct((g_pad, d_pad), jnp.float32),
        in_specs=[vmem] * 11,
        out_specs=vmem,
        compiler_params=pltpu.CompilerParams(vmem_limit_bytes=32 * 1024 * 1024),
        cost_estimate=pl.CostEstimate(flops=flops, transcendentals=0,
                                      bytes_accessed=bytes_accessed),
    )(x_p, a_p, p_p, w0, b0, w1, b1, w2, b2, wd, bd)


# --------------------------- parameter handling ------------------------------ #
def xavier_uniform(key, shape):
    fan_in, fan_out = shape
    limit = (6.0 / (fan_in + fan_out)) ** 0.5
    return jax.random.uniform(key, shape, jnp.float32, -limit, limit)


def init_params(key, in_feats, hidden, out_channels):
    keys = jax.random.split(key, 11)
    # conv0: in_feats -> hidden (self + neighbour weights, bias)
    ws0 = xavier_uniform(keys[0], (in_feats, hidden))
    wn0 = xavier_uniform(keys[1], (in_feats, hidden))
    b0 = jax.random.uniform(keys[2], (1, hidden), jnp.float32, -0.1, 0.1)
    # conv1: hidden -> hidden
    ws1 = xavier_uniform(keys[3], (hidden, hidden))
    wn1 = xavier_uniform(keys[4], (hidden, hidden))
    b1 = jax.random.uniform(keys[5], (1, hidden), jnp.float32, -0.1, 0.1)
    # conv2: hidden -> hidden (num_decoder_layers == 1, so conv out = hidden)
    ws2 = xavier_uniform(keys[6], (hidden, hidden))
    wn2 = xavier_uniform(keys[7], (hidden, hidden))
    b2 = jax.random.uniform(keys[8], (1, hidden), jnp.float32, -0.1, 0.1)
    # decoder: hidden -> out_channels
    wd = xavier_uniform(keys[9], (hidden, out_channels))
    bd = jax.random.uniform(keys[10], (1, out_channels), jnp.float32, -0.1, 0.1)
    return ((ws0, wn0, b0), (ws1, wn1, b1), (ws2, wn2, b2), (wd, bd))


def pack_params(params):
    """Pad to 128 lanes, stack [W_self; W_neigh], cast weights to bf16."""
    (ws0, wn0, b0), (ws1, wn1, b1), (ws2, wn2, b2), (wd, bd) = params

    def stack(ws, wn):
        return jnp.concatenate(
            [_pad2d(ws, LANE, LANE), _pad2d(wn, LANE, LANE)],
            axis=0).astype(jnp.bfloat16)                      # (2*128, 128)

    w0 = stack(ws0, wn0)
    w1 = stack(ws1, wn1)
    w2 = stack(ws2, wn2)
    wd_p = _pad2d(wd, LANE, LANE).astype(jnp.bfloat16)
    # biases stay f32 (elementwise adds run on the VPU in f32)
    b0p = _pad2d(b0, 1, LANE)
    b1p = _pad2d(b1, 1, LANE)
    b2p = _pad2d(b2, 1, LANE)
    bdp = _pad2d(bd, 1, LANE)
    return w0, b0p, w1, b1p, w2, b2p, wd_p, bdp


def densify_graph(edge_index, batch, num_nodes, num_graphs):
    """edge_index (2, E) int32, batch (N,) int32 -> dense A (N,N), P (G,N)."""
    src, dst = edge_index[0], edge_index[1]
    adj = jnp.zeros((num_nodes, num_nodes), jnp.float32).at[dst, src].add(1.0)
    pool = (jnp.arange(num_graphs)[:, None] == batch[None, :]).astype(jnp.float32)
    return adj, pool


# -------------------------- pure-JAX f32 reference --------------------------- #
def gnn_reference_f32(x, adj, pool, params):
    (ws0, wn0, b0), (ws1, wn1, b1), (ws2, wn2, b2), (wd, bd) = params
    h = x @ ws0 + (adj @ x) @ wn0 + b0
    h = jnp.maximum(h, 0.0)
    h = h @ ws1 + (adj @ h) @ wn1 + b1
    h = jnp.maximum(h, 0.0)
    h = h @ ws2 + (adj @ h) @ wn2 + b2
    g = pool @ h
    return g @ wd + bd


# --------------------------------- main -------------------------------------- #
if __name__ == "__main__":
    key = jax.random.PRNGKey(0)
    k_x, k_p = jax.random.split(key)

    NUM_NODES = 16          # two graphs of 8 nodes each
    NUM_FEATS = 4           # dataset.num_node_features (continuous floats)
    HIDDEN = 32             # hidden_channels
    OUT = 8                 # out_channels
    NUM_GRAPHS = 2

    # deterministic node features (continuous -> no Embedding encoder path)
    x = jax.random.normal(k_x, (NUM_NODES, NUM_FEATS), jnp.float32)

    # deterministic graph structure: an undirected ring inside each graph
    src = jnp.arange(NUM_NODES, dtype=jnp.int32)
    dst = jnp.where(src % 8 == 7, src - 7, src + 1).astype(jnp.int32)
    edge_index = jnp.stack([jnp.concatenate([src, dst]),
                            jnp.concatenate([dst, src])])
    batch = jnp.concatenate([jnp.zeros(8, jnp.int32), jnp.ones(8, jnp.int32)])

    adj, pool = densify_graph(edge_index, batch, NUM_NODES, NUM_GRAPHS)
    params = init_params(k_p, NUM_FEATS, HIDDEN, OUT)

    # --- pad & cast kernel operands (lane-dense, bf16 MXU inputs) ---
    n_pad = _round_up(NUM_NODES, SUBLANE)
    g_pad = _round_up(NUM_GRAPHS, SUBLANE)
    x_p = _pad2d(x, n_pad, LANE).astype(jnp.bfloat16)
    a_p = _pad2d(adj, n_pad, n_pad).astype(jnp.bfloat16)    # lossless: values 0/1
    p_p = _pad2d(pool, g_pad, n_pad).astype(jnp.bfloat16)   # lossless: values 0/1
    w0, b0, w1, b1, w2, b2, wd_p, bd_p = pack_params(params)

    out_pad = gnn_forward(x_p, a_p, p_p, w0, b0, w1, b1, w2, b2, wd_p, bd_p)
    out_pad = jax.block_until_ready(out_pad)
    out = out_pad[:NUM_GRAPHS, :OUT]

    # bf16-matched reference (identical math, plain JAX) -> tight check
    ref_bf16 = _gnn_math(x_p, a_p, p_p, w0, b0, w1, b1, w2, b2,
                         wd_p, bd_p)[:NUM_GRAPHS, :OUT]
    # full-precision semantic reference -> loose check (bf16 rounding only)
    ref_f32 = gnn_reference_f32(x, adj, pool, params)

    assert out.shape == (NUM_GRAPHS, OUT)
    assert jnp.allclose(out, ref_bf16, atol=1e-3, rtol=1e-3), \
        "kernel vs bf16-matched reference mismatch"
    assert jnp.allclose(out, ref_f32, atol=1e-1, rtol=1e-1), \
        "kernel vs f32 reference mismatch"

    print("KERNEL_OK")
</pallas_src>

<mosaic_0001>
module attributes {stable_mosaic.version = 11 : i64} {
  func.func @_gnn_kernel(%arg0: memref<16x128xbf16, #tpu.memory_space<vmem>>, %arg1: memref<16x16xbf16, #tpu.memory_space<vmem>>, %arg2: memref<8x16xbf16, #tpu.memory_space<vmem>>, %arg3: memref<256x128xbf16, #tpu.memory_space<vmem>>, %arg4: memref<1x128xf32, #tpu.memory_space<vmem>>, %arg5: memref<256x128xbf16, #tpu.memory_space<vmem>>, %arg6: memref<1x128xf32, #tpu.memory_space<vmem>>, %arg7: memref<256x128xbf16, #tpu.memory_space<vmem>>, %arg8: memref<1x128xf32, #tpu.memory_space<vmem>>, %arg9: memref<128x128xbf16, #tpu.memory_space<vmem>>, %arg10: memref<1x128xf32, #tpu.memory_space<vmem>>, %arg11: memref<8x128xf32, #tpu.memory_space<vmem>>) attributes {dimension_semantics = [], scalar_prefetch = 0 : i64, scratch_operands = 0 : i64, tpu.core_type = #tpu.core_type<tc>} {
    %c0 = arith.constant 0 : index
    %c0_0 = arith.constant 0 : index
    %0 = vector.load %arg0[%c0, %c0_0] : memref<16x128xbf16, #tpu.memory_space<vmem>>, vector<16x128xbf16>
    %c0_1 = arith.constant 0 : index
    %c0_2 = arith.constant 0 : index
    %1 = vector.load %arg1[%c0_1, %c0_2] : memref<16x16xbf16, #tpu.memory_space<vmem>>, vector<16x16xbf16>
    %c0_3 = arith.constant 0 : index
    %c0_4 = arith.constant 0 : index
    %2 = vector.load %arg2[%c0_3, %c0_4] : memref<8x16xbf16, #tpu.memory_space<vmem>>, vector<8x16xbf16>
    %c0_5 = arith.constant 0 : index
    %c0_6 = arith.constant 0 : index
    %3 = vector.load %arg3[%c0_5, %c0_6] : memref<256x128xbf16, #tpu.memory_space<vmem>>, vector<256x128xbf16>
    %c0_7 = arith.constant 0 : index
    %c0_8 = arith.constant 0 : index
    %4 = vector.load %arg4[%c0_7, %c0_8] : memref<1x128xf32, #tpu.memory_space<vmem>>, vector<1x128xf32>
    %c0_9 = arith.constant 0 : index
    %c0_10 = arith.constant 0 : index
    %5 = vector.load %arg5[%c0_9, %c0_10] : memref<256x128xbf16, #tpu.memory_space<vmem>>, vector<256x128xbf16>
    %c0_11 = arith.constant 0 : index
    %c0_12 = arith.constant 0 : index
    %6 = vector.load %arg6[%c0_11, %c0_12] : memref<1x128xf32, #tpu.memory_space<vmem>>, vector<1x128xf32>
    %c0_13 = arith.constant 0 : index
    %c0_14 = arith.constant 0 : index
    %7 = vector.load %arg7[%c0_13, %c0_14] : memref<256x128xbf16, #tpu.memory_space<vmem>>, vector<256x128xbf16>
    %c0_15 = arith.constant 0 : index
    %c0_16 = arith.constant 0 : index
    %8 = vector.load %arg8[%c0_15, %c0_16] : memref<1x128xf32, #tpu.memory_space<vmem>>, vector<1x128xf32>
    %c0_17 = arith.constant 0 : index
    %c0_18 = arith.constant 0 : index
    %9 = vector.load %arg9[%c0_17, %c0_18] : memref<128x128xbf16, #tpu.memory_space<vmem>>, vector<128x128xbf16>
    %c0_19 = arith.constant 0 : index
    %c0_20 = arith.constant 0 : index
    %10 = vector.load %arg10[%c0_19, %c0_20] : memref<1x128xf32, #tpu.memory_space<vmem>>, vector<1x128xf32>
    %cst = arith.constant dense<0.000000e+00> : vector<16x128xf32>
    %11 = tpu.matmul %1, %0, %cst {dimension_numbers = #tpu.dot_dimension_numbers<[1], [0], [0], [1], [0, 0, 1, 1], [], []>} : vector<16x16xbf16>, vector<16x128xbf16>, vector<16x128xf32> -> vector<16x128xf32>
    %12 = arith.truncf %11 : vector<16x128xf32> to vector<16x128xbf16>
    %13 = tpu.concatenate %0, %12 in 1 : vector<16x128xbf16>, vector<16x128xbf16> -> vector<16x256xbf16>
    %cst_21 = arith.constant dense<0.000000e+00> : vector<16x128xf32>
    %14 = tpu.matmul %13, %3, %cst_21 {dimension_numbers = #tpu.dot_dimension_numbers<[1], [0], [0], [1], [0, 0, 1, 1], [], []>} : vector<16x256xbf16>, vector<256x128xbf16>, vector<16x128xf32> -> vector<16x128xf32>
    %15 = vector.broadcast %4 : vector<1x128xf32> to vector<16x128xf32>
    %16 = arith.addf %14, %15 : vector<16x128xf32>
    %cst_22 = arith.constant 0.000000e+00 : f32
    %17 = vector.broadcast %cst_22 : f32 to vector<16x128xf32>
    %18 = arith.maximumf %16, %17 : vector<16x128xf32>
    %19 = arith.truncf %18 : vector<16x128xf32> to vector<16x128xbf16>
    %cst_23 = arith.constant dense<0.000000e+00> : vector<16x128xf32>
    %20 = tpu.matmul %1, %19, %cst_23 {dimension_numbers = #tpu.dot_dimension_numbers<[1], [0], [0], [1], [0, 0, 1, 1], [], []>} : vector<16x16xbf16>, vector<16x128xbf16>, vector<16x128xf32> -> vector<16x128xf32>
    %21 = arith.truncf %20 : vector<16x128xf32> to vector<16x128xbf16>
    %22 = tpu.concatenate %19, %21 in 1 : vector<16x128xbf16>, vector<16x128xbf16> -> vector<16x256xbf16>
    %cst_24 = arith.constant dense<0.000000e+00> : vector<16x128xf32>
    %23 = tpu.matmul %22, %5, %cst_24 {dimension_numbers = #tpu.dot_dimension_numbers<[1], [0], [0], [1], [0, 0, 1, 1], [], []>} : vector<16x256xbf16>, vector<256x128xbf16>, vector<16x128xf32> -> vector<16x128xf32>
    %24 = vector.broadcast %6 : vector<1x128xf32> to vector<16x128xf32>
    %25 = arith.addf %23, %24 : vector<16x128xf32>
    %cst_25 = arith.constant 0.000000e+00 : f32
    %26 = vector.broadcast %cst_25 : f32 to vector<16x128xf32>
    %27 = arith.maximumf %25, %26 : vector<16x128xf32>
    %28 = arith.truncf %27 : vector<16x128xf32> to vector<16x128xbf16>
    %cst_26 = arith.constant dense<0.000000e+00> : vector<16x128xf32>
    %29 = tpu.matmul %1, %28, %cst_26 {dimension_numbers = #tpu.dot_dimension_numbers<[1], [0], [0], [1], [0, 0, 1, 1], [], []>} : vector<16x16xbf16>, vector<16x128xbf16>, vector<16x128xf32> -> vector<16x128xf32>
    %30 = arith.truncf %29 : vector<16x128xf32> to vector<16x128xbf16>
    %31 = tpu.concatenate %28, %30 in 1 : vector<16x128xbf16>, vector<16x128xbf16> -> vector<16x256xbf16>
    %cst_27 = arith.constant dense<0.000000e+00> : vector<16x128xf32>
    %32 = tpu.matmul %31, %7, %cst_27 {dimension_numbers = #tpu.dot_dimension_numbers<[1], [0], [0], [1], [0, 0, 1, 1], [], []>} : vector<16x256xbf16>, vector<256x128xbf16>, vector<16x128xf32> -> vector<16x128xf32>
    %33 = vector.broadcast %8 : vector<1x128xf32> to vector<16x128xf32>
    %34 = arith.addf %32, %33 : vector<16x128xf32>
    %35 = arith.truncf %34 : vector<16x128xf32> to vector<16x128xbf16>
    %cst_28 = arith.constant dense<0.000000e+00> : vector<8x128xf32>
    %36 = tpu.matmul %2, %35, %cst_28 {dimension_numbers = #tpu.dot_dimension_numbers<[1], [0], [0], [1], [0, 0, 1, 1], [], []>} : vector<8x16xbf16>, vector<16x128xbf16>, vector<8x128xf32> -> vector<8x128xf32>
    %37 = arith.truncf %36 : vector<8x128xf32> to vector<8x128xbf16>
    %cst_29 = arith.constant dense<0.000000e+00> : vector<8x128xf32>
    %38 = tpu.matmul %37, %9, %cst_29 {dimension_numbers = #tpu.dot_dimension_numbers<[1], [0], [0], [1], [0, 0, 1, 1], [], []>} : vector<8x128xbf16>, vector<128x128xbf16>, vector<8x128xf32> -> vector<8x128xf32>
    %39 = vector.broadcast %10 : vector<1x128xf32> to vector<8x128xf32>
    %40 = arith.addf %38, %39 : vector<8x128xf32>
    %c0_30 = arith.constant 0 : index
    %c0_31 = arith.constant 0 : index
    %41 = vector.load %arg11[%c0_30, %c0_31] : memref<8x128xf32, #tpu.memory_space<vmem>>, vector<8x128xf32>
    tpu.vector_store %arg11[%c0_30, %c0_31], %40 {strides = array<i32>} : memref<8x128xf32, #tpu.memory_space<vmem>>, vector<8x128xf32>,
    return
  }
}

</mosaic_0001>

<bundles_post_ra>
// kernel: gnn_forward.1
= control target key start
LH: loop header
LB: loop body
LE: loop exit
PB: predicated region body
PF: predicated region fallthrough
CT: control target
= control target key end

     0   :  { %16 = vsyncpa [#allocation3], 0  ;;  %s1578_s0 = inlined_call_operand.hbm [shape: bf16[16,128], index: 0, kind: input, shape index: {}]   ;;  %s1579_s1 = inlined_call_operand.hbm [shape: bf16[16,16], index: 1, kind: input, shape index: {}]   ;;  %s1580_s2 = inlined_call_operand.hbm [shape: bf16[8,16], index: 2, kind: input, shape index: {}]   ;;  %s1581_s3 = inlined_call_operand.hbm [shape: bf16[256,128], index: 3, kind: input, shape index: {}]   ;;  %s1582_s4 = inlined_call_operand.vmem [shape: f32[1,128], index: 4, kind: input, shape index: {}]   ;;  %s1583_s5 = inlined_call_operand.hbm [shape: bf16[256,128], index: 5, kind: input, shape index: {}]   ;;  %s1584_s6 = inlined_call_operand.vmem [shape: f32[1,128], index: 6, kind: input, shape index: {}]   ;;  %s1585_s7 = inlined_call_operand.hbm [shape: bf16[256,128], index: 7, kind: input, shape index: {}]   ;;  %s1586_s8 = inlined_call_operand.vmem [shape: f32[1,128], index: 8, kind: input, shape index: {}]   ;;  %s1587_s9 = inlined_call_operand.hbm [shape: bf16[128,128], index: 9, kind: input, shape index: {}]   ;;  %s1588_s10 = inlined_call_operand.vmem [shape: f32[1,128], index: 10, kind: input, shape index: {}]   ;;  %s1589_s11 = inlined_call_operand.hbm [shape: f32[8,128], index: 11, kind: output, shape index: {}]  }
   0x1   :  { %17 = vsyncpa [#allocation6], 0 }
   0x2   :  { %18 = vsyncpa [#allocation9], 0 }
   0x3   :  { %19 = vsyncpa [#allocation12], 0 }
   0x4   :  { %20 = vsyncpa [#allocation4], 0  ;;  %s1421_s17 = smov [#allocation5]   ;;  %s1422_s19 = smov [#allocation8]  }
   0x5   :  { %s38_s18 = sshll.u32 %s1421_s17, 4  ;;  %s60_s20 = sshll.u32 %s1422_s19, 4  ;;  %s39_s18 = int_to_ptr.vmem [resolvable:$true] %s38_s18  ;;  %s61_s20 = int_to_ptr.vmem [resolvable:$true] %s60_s20 }
   0x6   :  { %s1259_s21 = scalar_lea.vmem %s39_s18, 128  ;;  %p1264_p1 = scmp.lt.s32.totalorder %s39_s18, %s39_s18 }
   0x7   :  { %p1260_p0 = scmp.ne.s32.totalorder %s39_s18, %s1259_s21  ;;  %p1265_p2 = scmp.lt.s32.totalorder %s1259_s21, %s1259_s21 }
   0x9   :  { %p1266_p3 = por %p1265_p2, %p1264_p1 }
   0xb   :  { %p1267_p4 = pnand %p1266_p3, %p1260_p0 }
   0xd   :  { %1270 = shalt.err (!%p1267_p4)
}
   0xe   :  { %s1423_s22 = smov 64   ;;  %s1424_s23 = smov 4  }
   0xf   :  { %44 = dma.hbm_to_vmem [thread:$0]  %s1579_s1, 128, %s39_s18, [#allocation6], %s1423_s22, %s1423_s22, %s1424_s23  }
  0x10   :  { %s1279_s26 = scalar_lea.vmem %s61_s20, 2048  ;;  %p1284_p6 = scmp.lt.s32.totalorder %s61_s20, %s61_s20 }
  0x11   :  { %p1280_p5 = scmp.ne.s32.totalorder %s61_s20, %s1279_s26  ;;  %p1285_p7 = scmp.lt.s32.totalorder %s1279_s26, %s1279_s26 }
  0x13   :  { %p1286_p8 = por %p1285_p7, %p1284_p6 }
  0x15   :  { %p1287_p9 = pnand %p1286_p8, %p1280_p5 }
  0x17   :  { %1290 = shalt.err (!%p1287_p9)
}
  0x18   :  { %66 = dma.hbm_to_vmem [thread:$0]  %s1581_s3, 2048, %s61_s20, [#allocation9], %s1423_s22, %s1423_s22, %s1424_s23  }
  0x19   :  { %s1425_s29 = smov [#allocation11]   ;;  %s1426_s12 = smov [#allocation2]  }
  0x1a   :  { %s88_s30 = sshll.u32 %s1425_s29, 4  ;;  %s26_s13 = sshll.u32 %s1426_s12, 4  ;;  %s89_s30 = int_to_ptr.vmem [resolvable:$true] %s88_s30  ;;  %s27_s13 = int_to_ptr.vmem [resolvable:$true] %s26_s13 }
  0x1b   :  { %s1299_s1 = scalar_lea.vmem %s89_s30, 2048  ;;  %p1304_p11 = scmp.lt.s32.totalorder %s89_s30, %s89_s30 }
  0x1c   :  { %p1300_p10 = scmp.ne.s32.totalorder %s89_s30, %s1299_s1  ;;  %p1305_p12 = scmp.lt.s32.totalorder %s1299_s1, %s1299_s1 }
  0x1e   :  { %p1306_p13 = por %p1305_p12, %p1304_p11 }
  0x20   :  { %p1307_p0 = pnand %p1306_p13, %p1300_p10 }
  0x22   :  { %1310 = shalt.err (!%p1307_p0)
}
  0x23   :  { %94 = dma.hbm_to_vmem [thread:$0]  %s1585_s7, 2048, %s89_s30, [#allocation12], %s1423_s22, %s1423_s22, %s1424_s23  }
  0x24   :  { %s1319_s3 = scalar_lea.vmem %s27_s13, 128  ;;  %p1324_p2 = scmp.lt.s32.totalorder %s27_s13, %s27_s13 }
  0x25   :  { %p1320_p1 = scmp.ne.s32.totalorder %s27_s13, %s1319_s3  ;;  %p1325_p3 = scmp.lt.s32.totalorder %s1319_s3, %s1319_s3 }
  0x27   :  { %p1326_p4 = por %p1325_p3, %p1324_p2 }
  0x29   :  { %p1327_p5 = pnand %p1326_p4, %p1320_p1 }
  0x2b   :  { %1330 = shalt.err (!%p1327_p5)
}
  0x2c   :  { %32 = dma.hbm_to_vmem [thread:$0]  %s1578_s0, 128, %s27_s13, [#allocation3], %s1423_s22, %s1423_s22, %s1424_s23  }
  0x2d   :  { %s1427_s18 = smov [#allocation7]   ;;  %s1428_s20 = smov [#allocation10]  }
  0x2e   :  { %s51_s19 = sshll.u32 %s1427_s18, 4  ;;  %s74_s21 = sshll.u32 %s1428_s20, 4  ;;  %s52_s19 = int_to_ptr.vmem [resolvable:$true] %s51_s19  ;;  %s75_s21 = int_to_ptr.vmem [resolvable:$true] %s74_s21 }
  0x2f   :  { %s1339_s7 = scalar_lea.vmem %s52_s19, 64  ;;  %p1344_p7 = scmp.lt.s32.totalorder %s52_s19, %s52_s19 }
  0x30   :  { %p1340_p6 = scmp.ne.s32.totalorder %s52_s19, %s1339_s7  ;;  %p1345_p8 = scmp.lt.s32.totalorder %s1339_s7, %s1339_s7 }
  0x32   :  { %p1346_p9 = por %p1345_p8, %p1344_p7 }
  0x34   :  { %p1347_p10 = pnand %p1346_p9, %p1340_p6 }
  0x36   :  { %1350 = shalt.err (!%p1347_p10)
}
  0x37   :  { %54 = dma.hbm_to_vmem [thread:$0]  %s1580_s2, 64, %s52_s19, [#allocation6]  }
  0x38   :  { %s1359_s26 = scalar_lea.vmem %s75_s21, 2048  ;;  %p1364_p12 = scmp.lt.s32.totalorder %s75_s21, %s75_s21 }
  0x39   :  { %p1360_p11 = scmp.ne.s32.totalorder %s75_s21, %s1359_s26  ;;  %p1365_p13 = scmp.lt.s32.totalorder %s1359_s26, %s1359_s26 }
  0x3b   :  { %p1366_p0 = por %p1365_p13, %p1364_p12 }
  0x3d   :  { %p1367_p1 = pnand %p1366_p0, %p1360_p11 }
  0x3f   :  { %1370 = shalt.err (!%p1367_p1)
}
  0x40   :  { %80 = dma.hbm_to_vmem [thread:$0]  %s1583_s5, 2048, %s75_s21, [#allocation9], %s1423_s22, %s1423_s22, %s1424_s23  }
  0x41   :  { %s1429_s28 = smov [#allocation13]  }
  0x42   :  { %s102_s29 = sshll.u32 %s1429_s28, 4  ;;  %s103_s29 = int_to_ptr.vmem [resolvable:$true] %s102_s29 }
  0x43   :  { %s1379_s30 = scalar_lea.vmem %s103_s29, 1024  ;;  %p1384_p3 = scmp.lt.s32.totalorder %s103_s29, %s103_s29 }
  0x44   :  { %p1380_p2 = scmp.ne.s32.totalorder %s103_s29, %s1379_s30  ;;  %p1385_p4 = scmp.lt.s32.totalorder %s1379_s30, %s1379_s30 }
  0x46   :  { %p1386_p5 = por %p1385_p4, %p1384_p3 }
  0x48   :  { %p1387_p6 = pnand %p1386_p5, %p1380_p2 }
  0x4a   :  { %1390 = shalt.err (!%p1387_p6)
}
  0x4b   :  { %108 = dma.hbm_to_vmem [thread:$0]  %s1587_s9, 1024, %s103_s29, [#allocation12], %s1423_s22, %s1423_s22, %s1424_s23  }
  0x4c   :  { %1411 = dma.done.wait [#allocation3], 128  }
  0x4d   :  { %1412 = vsyncadd [#allocation3], 4294967168 }
  0x4e   :  { %1413 = dma.done.wait [#allocation6], 192  }
  0x4f   :  { %1414 = vsyncadd [#allocation6], 4294967104 }
  0x50   :  { %1415 = dma.done.wait [#allocation9], 4096  }
  0x51   :  { %1416 = vsyncadd [#allocation9], 4294963200 }
  0x52   :  { %1417 = dma.done.wait [#allocation12], 3072  }
  0x53   :  { %1418 = vsyncadd [#allocation12], 4294964224  ;;  %v1430_v0 = vmov 0.0   ;;  %vm1431_vm0 = vmmov 0   ;;  %v1193_v1 = vld [vmem:[#allocation2] sm:$0xff]   ;;  %v1538_v2 = vld [vmem:[#allocation5] sm:$0xff]  }
  0x54   :  { %1137 = vmatprep.subr.bf16.mxu1 %v1430_v0  ;;  %1139 = vmatprep.mubr.msk.bf16.mxu1 %vm1431_vm0, %v1430_v0  ;;  %vm265_vm1 = vcmask 130048   ;;  %v1195_v3 = vld [vmem:[#allocation8 + $0x78] sm:$0xff]   ;;  %v1197_v5 = vld [vmem:[#allocation8 + $0x70] sm:$0xff]   ;;  %v1199_v7 = vld [vmem:[#allocation8 + $0x68] sm:$0xff]   ;;  %s1432_s1 = smov [#allocation14]  }
  0x55   :  { %1143 = vmatprep.subr.bf16.mxu0 %v1430_v0  ;;  %1145 = vmatprep.mubr.msk.bf16.mxu0 %vm1431_vm0, %v1430_v0  ;;  %v1196_v4 = vld [vmem:[#allocation8 + $0x38] sm:$0xff]   ;;  %v1198_v6 = vld [vmem:[#allocation8 + $0x30] sm:$0xff]   ;;  %v1200_v8 = vld [vmem:[#allocation8 + $0x28] sm:$0xff]   ;;  %s976_s14 = sshll.u32 %s1432_s1, 4  ;;  %s977_s14 = int_to_ptr.vmem [resolvable:$true] %s976_s14 }
  0x56   :  { %1138 = vmatpush3.bf16.msra.mxu1 %v1193_v1  ;;  %v1201_v9 = vld [vmem:[#allocation8 + $0x60] sm:$0xff]   ;;  %v1203_v11 = vld [vmem:[#allocation8 + $0x58] sm:$0xff]   ;;  %v1205_v13 = vld [vmem:[#allocation8 + $0x50] sm:$0xff]   ;;  %s1391_s15 = scalar_lea.vmem %s977_s14, 128  ;;  %p1396_p8 = scmp.lt.s32.totalorder %s977_s14, %s977_s14 }
  0x57   :  { %1056 = vmatprep.subr.bf16.mxu1 %v1195_v3  ;;  %v1202_v10 = vld [vmem:[#allocation8 + $0x20] sm:$0xff]   ;;  %v1204_v12 = vld [vmem:[#allocation8 + $0x18] sm:$0xff]   ;;  %v1206_v14 = vld [vmem:[#allocation8 + $0x10] sm:$0xff]   ;;  %p1392_p7 = scmp.ne.s32.totalorder %s977_s14, %s1391_s15  ;;  %p1397_p9 = scmp.lt.s32.totalorder %s1391_s15, %s1391_s15 }
  0x58   :  { %v1207_v15 = vld [vmem:[#allocation8 + $0x48] sm:$0xff]   ;;  %v1209_v17 = vld [vmem:[#allocation8 + $0x40] sm:$0xff]   ;;  %v1211_v35 = vld [vmem:[#allocation10 + $0x78] sm:$0xff]  }
  0x59   :  { %1140 = vmatmul.mubr.msk.bf16.vlgmr.msra.gmra.mxu1 %vm265_vm1, %v1538_v2  ;;  %v1208_v16 = vld [vmem:[#allocation8 + $0x8] sm:$0xff]   ;;  %v1210_v18 = vld [vmem:[#allocation8] sm:$0xff]   ;;  %v1212_v37 = vld [vmem:[#allocation10 + $0x38] sm:$0xff]   ;;  %p1398_p10 = por %p1397_p9, %p1396_p8 }
  0x5a   :  { %1057 = vmatpush3.bf16.msra.mxu1 %v1196_v4  ;;  %v991_v27 = vld [vmem:[%s1582_s4] ss:$0 sm:$0xff]  ;;  %v1213_v38 = vld [vmem:[#allocation10 + $0x70] sm:$0xff]   ;;  %v1217_v42 = vld [vmem:[#allocation10 + $0x60] sm:$0xff]  }
  0x5b   :  { %1058 = vmatprep.subr.bf16.mxu1 %v1197_v5  ;;  %v1214_v39 = vld [vmem:[#allocation10 + $0x30] sm:$0xff]   ;;  %v1215_v40 = vld [vmem:[#allocation10 + $0x68] sm:$0xff]   ;;  %v1218_v43 = vld [vmem:[#allocation10 + $0x20] sm:$0xff]   ;;  %p1399_p11 = pnand %p1398_p10, %p1392_p7 }
  0x5c   :  { %v1216_v41 = vld [vmem:[#allocation10 + $0x28] sm:$0xff]   ;;  %v1219_v44 = vld [vmem:[#allocation10 + $0x58] sm:$0xff]   ;;  %v1221_v46 = vld [vmem:[#allocation10 + $0x50] sm:$0xff]  }
  0x5d   :  { %v1220_v45 = vld [vmem:[#allocation10 + $0x18] sm:$0xff]   ;;  %v1222_v47 = vld [vmem:[#allocation10 + $0x10] sm:$0xff]   ;;  %v1223_v48 = vld [vmem:[#allocation10 + $0x48] sm:$0xff]  }
  0x5e   :  { %1059 = vmatpush3.bf16.msra.mxu1 %v1198_v6  ;;  %v1224_v49 = vld [vmem:[#allocation10 + $0x8] sm:$0xff]   ;;  %v1225_v50 = vld [vmem:[#allocation10 + $0x40] sm:$0xff]   ;;  %v1227_v6 = vld [vmem:[#allocation11 + $0x78] sm:$0xff]  }
  0x5f   :  { %1060 = vmatprep.subr.bf16.mxu1 %v1199_v7  ;;  %v1226_v51 = vld [vmem:[#allocation10] sm:$0xff]   ;;  %v1009_v60 = vld [vmem:[%s1584_s6] ss:$0 sm:$0xff] }
  0x62   :  { %1061 = vmatpush3.bf16.msra.mxu1 %v1200_v8  ;;  %v1228_v8 = vld [vmem:[#allocation11 + $0x38] sm:$0xff]  }
  0x63   :  { %1062 = vmatprep.subr.bf16.mxu1 %v1201_v9  ;;  %v1229_v9 = vld [vmem:[#allocation11 + $0x70] sm:$0xff]  }
  0x66   :  { %1063 = vmatpush3.bf16.msra.mxu1 %v1202_v10  ;;  %v1230_v10 = vld [vmem:[#allocation11 + $0x30] sm:$0xff]  }
  0x67   :  { %1064 = vmatprep.subr.bf16.mxu1 %v1203_v11  ;;  %v1231_v11 = vld [vmem:[#allocation11 + $0x68] sm:$0xff]  }
  0x6a   :  { %1065 = vmatpush3.bf16.msra.mxu1 %v1204_v12  ;;  %v1232_v12 = vld [vmem:[#allocation11 + $0x28] sm:$0xff]  }
  0x6b   :  { %1066 = vmatprep.subr.bf16.mxu1 %v1205_v13  ;;  %v1233_v13 = vld [vmem:[#allocation11 + $0x60] sm:$0xff]  }
  0x6e   :  { %1067 = vmatpush3.bf16.msra.mxu1 %v1206_v14  ;;  %v1234_v14 = vld [vmem:[#allocation11 + $0x20] sm:$0xff]  }
  0x6f   :  { %1068 = vmatprep.subr.bf16.mxu1 %v1207_v15  ;;  %v1235_v15 = vld [vmem:[#allocation11 + $0x58] sm:$0xff]  }
  0x72   :  { %1069 = vmatpush3.bf16.msra.mxu1 %v1208_v16  ;;  %v1236_v16 = vld [vmem:[#allocation11 + $0x18] sm:$0xff]  }
  0x73   :  { %1070 = vmatprep.subr.bf16.mxu1 %v1209_v17  ;;  %v1237_v17 = vld [vmem:[#allocation11 + $0x50] sm:$0xff]  }
  0x76   :  { %1071 = vmatpush3.bf16.msra.mxu1 %v1210_v18  ;;  %v1238_v18 = vld [vmem:[#allocation11 + $0x10] sm:$0xff]  }
  0x77   :  { %1149 = vmatprep.subr.bf16.mxu1 %v1430_v0 }
 0x119   :  { %v303_v19 = vpop.f32.mrf.mxu1 }
 0x11b   :  { %v1141_v20 = vpop.f32.mrf.mxu1 }
 0x11c   :  { %v1241_v20 = vld [vmem:[#allocation11 + $0x40] sm:$0xff]  }
 0x11d   :  { %v306_v21 = vpop.f32.mrf.mxu1 }
 0x11e   :  { %v310_v22 = vpack.c.bf16 %v306_v21, %v303_v19  ;;  %v1240_v19 = vld [vmem:[#allocation11 + $0x8] sm:$0xff]   ;;  %v1242_v21 = vld [vmem:[#allocation11] sm:$0xff]  }
 0x11f   :  { %v1142_v23 = vpop.f32.mrf.mxu1 }
 0x120   :  { %445 = vmatprep.mubr.bf16.mxu1 %v310_v22 }
 0x121   :  { %446 = vmatmul.mubr.bf16.vlgmr.msra.gmra.mxu1 %v1193_v1 }
 0x122   :  { %1151 = vmatprep.mubr.msk.bf16.mxu1 %vm1431_vm0, %v1430_v0 }
 0x1e1   :  { %v1072_v24 = vpop.f32.mrf.mxu1 }
 0x1e3   :  { %v1073_v25 = vpop.f32.mrf.mxu1 }
 0x1e4   :  { %v1074_v26 = vadd.f32 %v1073_v25, %v1072_v24 }
 0x1e5   :  { %v1075_v28 = vpop.f32.mrf.mxu1 }
 0x1e6   :  { %v448_v30 = vadd.f32 %v1074_v26, %v991_v27 }
 0x1e7   :  { %v1076_v29 = vpop.f32.mrf.mxu1 }
 0x1e8   :  { %v1077_v31 = vadd.f32 %v1076_v29, %v1075_v28  ;;  %v454_v33 = vmax.f32 %v448_v30, 0.0 }
 0x1ea   :  { %v451_v32 = vadd.f32 %v1077_v31, %v991_v27  ;;  %v1027_v31 = vld [vmem:[%s1586_s8] ss:$0 sm:$0xff] }
 0x1ec   :  { %v455_v34 = vmax.f32 %v451_v32, 0.0 }
 0x1ee   :  { %v456_v36 = vpack.c.bf16 %v455_v34, %v454_v33 }
 0x1f0   :  { %1144 = vmatpush3.bf16.msra.mxu0 %v456_v36 }
 0x1f1   :  { %1080 = vmatprep.subr.bf16.mxu0 %v1211_v35 }
 0x1f3   :  { %1146 = vmatmul.mubr.msk.bf16.vlgmr.msra.gmra.mxu0 %vm265_vm1, %v1538_v2 }
 0x1f4   :  { %1081 = vmatpush3.bf16.msra.mxu0 %v1212_v37  ;;  %v137_v37 = vld [vmem:[#allocation7] sm:$0xf] }
 0x1f5   :  { %1082 = vmatprep.subr.bf16.mxu0 %v1213_v38  ;;  %v1243_v38 = vld [vmem:[#allocation13 + $0x38] sm:$0xff]  }
 0x1f8   :  { %1083 = vmatpush3.bf16.msra.mxu0 %v1214_v39  ;;  %v1244_v39 = vld [vmem:[#allocation13 + $0x30] sm:$0xff]  }
 0x1f9   :  { %1084 = vmatprep.subr.bf16.mxu0 %v1215_v40  ;;  %v1245_v40 = vld [vmem:[#allocation13 + $0x28] sm:$0xff]  }
 0x1fc   :  { %1085 = vmatpush3.bf16.msra.mxu0 %v1216_v41  ;;  %v1246_v41 = vld [vmem:[#allocation13 + $0x20] sm:$0xff]  }
 0x1fd   :  { %1086 = vmatprep.subr.bf16.mxu0 %v1217_v42  ;;  %v1247_v42 = vld [vmem:[#allocation13 + $0x18] sm:$0xff]  }
 0x200   :  { %1087 = vmatpush3.bf16.msra.mxu0 %v1218_v43  ;;  %v1248_v43 = vld [vmem:[#allocation13 + $0x10] sm:$0xff]  }
 0x201   :  { %1088 = vmatprep.subr.bf16.mxu0 %v1219_v44  ;;  %v1249_v44 = vld [vmem:[#allocation13 + $0x8] sm:$0xff]  }
 0x204   :  { %1089 = vmatpush3.bf16.msra.mxu0 %v1220_v45  ;;  %v1250_v45 = vld [vmem:[#allocation13] sm:$0xff]  }
 0x205   :  { %1090 = vmatprep.subr.bf16.mxu0 %v1221_v46 }
 0x208   :  { %1091 = vmatpush3.bf16.msra.mxu0 %v1222_v47 }
 0x209   :  { %1092 = vmatprep.subr.bf16.mxu0 %v1223_v48 }
 0x20c   :  { %1093 = vmatpush3.bf16.msra.mxu0 %v1224_v49 }
 0x20d   :  { %1094 = vmatprep.subr.bf16.mxu0 %v1225_v50 }
 0x210   :  { %1095 = vmatpush3.bf16.msra.mxu0 %v1226_v51  ;;  %v1045_v51 = vld [vmem:[%s1588_s10] ss:$0 sm:$0xff] }
 0x211   :  { %1155 = vmatprep.subr.bf16.mxu0 %v1430_v0 }
 0x2b3   :  { %v491_v52 = vpop.f32.mrf.mxu0 }
 0x2b5   :  { %v1147_v53 = vpop.f32.mrf.mxu0 }
 0x2b7   :  { %v494_v54 = vpop.f32.mrf.mxu0 }
 0x2b8   :  { %v498_v55 = vpack.c.bf16 %v494_v54, %v491_v52 }
 0x2b9   :  { %v1148_v56 = vpop.f32.mrf.mxu0 }
 0x2ba   :  { %633 = vmatprep.mubr.bf16.mxu0 %v498_v55 }
 0x2bb   :  { %634 = vmatmul.mubr.bf16.vlgmr.msra.gmra.mxu0 %v456_v36 }
 0x2bc   :  { %1157 = vmatprep.mubr.msk.bf16.mxu0 %vm1431_vm0, %v1430_v0 }
 0x37b   :  { %v1096_v57 = vpop.f32.mrf.mxu0 }
 0x37d   :  { %v1097_v58 = vpop.f32.mrf.mxu0 }
 0x37e   :  { %v1098_v59 = vadd.f32 %v1097_v58, %v1096_v57 }
 0x37f   :  { %v1099_v61 = vpop.f32.mrf.mxu0 }
 0x380   :  { %v636_v63 = vadd.f32 %v1098_v59, %v1009_v60 }
 0x381   :  { %v1100_v62 = vpop.f32.mrf.mxu0 }
 0x382   :  { %v1101_v1 = vadd.f32 %v1100_v62, %v1099_v61  ;;  %v642_v4 = vmax.f32 %v636_v63, 0.0 }
 0x384   :  { %v639_v3 = vadd.f32 %v1101_v1, %v1009_v60 }
 0x386   :  { %v643_v5 = vmax.f32 %v639_v3, 0.0 }
 0x388   :  { %v644_v7 = vpack.c.bf16 %v643_v5, %v642_v4 }
 0x38a   :  { %1150 = vmatpush3.bf16.msra.mxu1 %v644_v7 }
 0x38b   :  { %1104 = vmatprep.subr.bf16.mxu1 %v1227_v6 }
 0x38d   :  { %1152 = vmatmul.mubr.msk.bf16.vlgmr.msra.gmra.mxu1 %vm265_vm1, %v1538_v2  ;;  %v1239_v2 = vld [vmem:[#allocation11 + $0x48] sm:$0xff]  }
 0x38e   :  { %1105 = vmatpush3.bf16.msra.mxu1 %v1228_v8 }
 0x38f   :  { %1106 = vmatprep.subr.bf16.mxu1 %v1229_v9 }
 0x392   :  { %1107 = vmatpush3.bf16.msra.mxu1 %v1230_v10 }
 0x393   :  { %1108 = vmatprep.subr.bf16.mxu1 %v1231_v11 }
 0x396   :  { %1109 = vmatpush3.bf16.msra.mxu1 %v1232_v12 }
 0x397   :  { %1110 = vmatprep.subr.bf16.mxu1 %v1233_v13 }
 0x39a   :  { %1111 = vmatpush3.bf16.msra.mxu1 %v1234_v14 }
 0x39b   :  { %1112 = vmatprep.subr.bf16.mxu1 %v1235_v15 }
 0x39e   :  { %1113 = vmatpush3.bf16.msra.mxu1 %v1236_v16 }
 0x39f   :  { %1114 = vmatprep.subr.bf16.mxu1 %v1237_v17 }
 0x3a2   :  { %1115 = vmatpush3.bf16.msra.mxu1 %v1238_v18 }
 0x3a3   :  { %1116 = vmatprep.subr.bf16.mxu1 %v1239_v2 }
 0x3a6   :  { %1117 = vmatpush3.bf16.msra.mxu1 %v1240_v19 }
 0x3a7   :  { %1118 = vmatprep.subr.bf16.mxu1 %v1241_v20 }
 0x3aa   :  { %1119 = vmatpush3.bf16.msra.mxu1 %v1242_v21 }
 0x44d   :  { %v679_v22 = vpop.f32.mrf.mxu1 }
 0x44f   :  { %v1153_v23 = vpop.f32.mrf.mxu1 }
 0x451   :  { %v682_v24 = vpop.f32.mrf.mxu1 }
 0x452   :  { %v686_v25 = vpack.c.bf16 %v682_v24, %v679_v22 }
 0x453   :  { %v1154_v26 = vpop.f32.mrf.mxu1 }
 0x454   :  { %821 = vmatprep.mubr.bf16.mxu1 %v686_v25 }
 0x455   :  { %822 = vmatmul.mubr.bf16.vlgmr.msra.gmra.mxu1 %v644_v7 }
 0x515   :  { %v1120_v27 = vpop.f32.mrf.mxu1 }
 0x517   :  { %v1121_v28 = vpop.f32.mrf.mxu1 }
 0x518   :  { %v1122_v30 = vadd.f32 %v1121_v28, %v1120_v27 }
 0x519   :  { %v1123_v29 = vpop.f32.mrf.mxu1 }
 0x51a   :  { %v824_v34 = vadd.f32 %v1122_v30, %v1027_v31 }
 0x51b   :  { %v1124_v32 = vpop.f32.mrf.mxu1 }
 0x51c   :  { %v1125_v33 = vadd.f32 %v1124_v32, %v1123_v29 }
 0x51e   :  { %v827_v35 = vadd.f32 %v1125_v33, %v1027_v31 }
 0x520   :  { %v830_v36 = vpack.c.bf16 %v827_v35, %v824_v34 }
 0x522   :  { %1156 = vmatpush3.bf16.msra.mxu0 %v830_v36 }
 0x523   :  { %1161 = vmatprep.subr.bf16.mxu0 %v1430_v0 }
 0x525   :  { %1158 = vmatmul.mubr.msk.bf16.vlgmr.msra.gmra.mxu0 %vm265_vm1, %v137_v37 }
 0x526   :  { %1162 = vmatpush3.bf16.msra.mxu0 %v1243_v38  ;;  %1177 = vmatprep.mubr.msk.bf16.mxu0 %vm1431_vm0, %v1430_v0 }
 0x527   :  { %1163 = vmatprep.subr.bf16.mxu0 %v1430_v0 }
 0x52a   :  { %1164 = vmatpush3.bf16.msra.mxu0 %v1244_v39 }
 0x52b   :  { %1165 = vmatprep.subr.bf16.mxu0 %v1430_v0 }
 0x52e   :  { %1166 = vmatpush3.bf16.msra.mxu0 %v1245_v40 }
 0x52f   :  { %1167 = vmatprep.subr.bf16.mxu0 %v1430_v0 }
 0x532   :  { %1168 = vmatpush3.bf16.msra.mxu0 %v1246_v41 }
 0x533   :  { %1169 = vmatprep.subr.bf16.mxu0 %v1430_v0 }
 0x536   :  { %1170 = vmatpush3.bf16.msra.mxu0 %v1247_v42 }
 0x537   :  { %1171 = vmatprep.subr.bf16.mxu0 %v1430_v0 }
 0x53a   :  { %1172 = vmatpush3.bf16.msra.mxu0 %v1248_v43 }
 0x53b   :  { %1173 = vmatprep.subr.bf16.mxu0 %v1430_v0 }
 0x53e   :  { %1174 = vmatpush3.bf16.msra.mxu0 %v1249_v44 }
 0x53f   :  { %1175 = vmatprep.subr.bf16.mxu0 %v1430_v0 }
 0x542   :  { %1176 = vmatpush3.bf16.msra.mxu0 %v1250_v45 }
 0x5e5   :  { %v868_v46 = vpop.f32.mrf.mxu0 }
 0x5e6   :  { %v874_v47 = vpack.c.bf16 %v868_v46, %v868_v46 }
 0x5e7   :  { %v1159_v48 = vpop.f32.mrf.mxu0 }
 0x5e8   :  { %1178 = vmatmul.mubr.bf16.vlgmr.msra.gmra.mxu0 %v874_v47 }
 0x5e9   :  { %v871_v49 = vpop.f32.mrf.mxu0 }
 0x5eb   :  { %v1160_v50 = vpop.f32.mrf.mxu0 }
 0x6a8   :  { %v963_v52 = vpop.f32.mrf.mxu0 }
 0x6a9   :  { %v964_v53 = vadd.f32 %v1045_v51, %v963_v52 }
 0x6aa   :  { %v1179_v54 = vpop.f32.mrf.mxu0 }
 0x6ab   :  { %969 = vst [vmem:[#allocation14] sm:$0xff] %v964_v53 }
 0x6ac   :  { %v966_v0 = vpop.f32.mrf.mxu0 }
 0x6ad   :  { %1402 = shalt.err (!%p1399_p11)
}
 0x6ae   :  { %979 = dma.vmem_to_hbm [thread:$0]  %s977_s14, 128, %s1589_s11, [#allocation4]   ;;  %v1180_v55 = vpop.f32.mrf.mxu0 }
 0x6af   :  { %1419 = dma.done.wait [#allocation4], 128  }
 0x6b0   :  { %1420 = vsyncadd [#allocation4], 4294967168 }
 0x6b1   :  { %983 = vsyncpa [#allocation3], 1 }
 0x6b2   :  { %984 = vsyncpa [#allocation6], 1 }
 0x6b3   :  { %985 = vsyncpa [#allocation9], 1 }
 0x6b4   :  { %986 = vsyncpa [#allocation12], 1 }
 0x6b5   :  { %987 = vsyncpa [#allocation4], 1 }

</bundles_post_ra>
